<compile_context>
chip_gen: v7x
topology: tpu7x:2x2x1
jax: 0.10.0
libtpu: 0.0.40
codegen_flags: <defaults>
</compile_context>

<pallas_src>
import functools

import jax
import jax.numpy as jnp
from jax.experimental import pallas as pl
from jax.experimental.pallas import tpu as pltpu

# Tap ordering shared by the weight packing, the border masks and the kernel.
_TAPS = tuple((dy, dx) for dy in (-1, 0, 1) for dx in (-1, 0, 1))


# ----------------------------------------------------------------------------
# Kernel
# ----------------------------------------------------------------------------
def fused_block_kernel(x_ref, w1_ref, w2_ref, bias_ref, mask_ref, o_ref,
                       patches_ref, *, H, W, C):
    """relu(bn2(conv2(relu(bn2(conv1(x))))) + x), fully fused in VMEM."""
    HW = H * W
    x = x_ref[0]                       # (C, HW) f32, spatial axis on lanes
    bias = bias_ref[...]               # (C, 1)

    def conv3x3(inp, w_ref_):
        # im2col: pack the 9 shifted (and border-masked) copies of `inp` into
        # the (9*C, HW) VMEM scratch, then do a single MXU contraction.
        for t, (dy, dx) in enumerate(_TAPS):
            d = dy * W + dx
            rows = pl.ds(t * C, C)
            if d == 0:
                patches_ref[rows, :] = inp
            else:
                # out[p] = inp[p + d]; roll wraps are zeroed by the mask.
                shifted = pltpu.roll(inp, shift=(-d) % HW, axis=1)
                patches_ref[rows, :] = shifted * mask_ref[t:t + 1, :]
        # (C, 9C) @ (9C, HW) -> (C, HW); BN scale already folded into weights.
        # TODO(synk): cast MXU operands to bf16 on v6e/v7x (needs looser tol).
        return jnp.dot(w_ref_[...], patches_ref[...],
                       preferred_element_type=jnp.float32) + bias

    h = jnp.maximum(conv3x3(x, w1_ref), 0.0)       # relu(bn2(conv1(x)))
    y = conv3x3(h, w2_ref) + x                     # bn2(conv2(h)) + identity
    o_ref[0] = jnp.maximum(y, 0.0).astype(o_ref.dtype)


# ----------------------------------------------------------------------------
# Wrapper
# ----------------------------------------------------------------------------
def _pack_weight(w_oihw, scale):
    """(Cout, Cin, 3, 3) OIHW -> (Cout, 9*Cin); K ordered tap-major/Cin-minor;
    per-output-channel folded-BN scale baked in."""
    Cout, Cin = w_oihw.shape[0], w_oihw.shape[1]
    w = w_oihw * scale[:, None, None, None]
    return jnp.transpose(w, (0, 2, 3, 1)).reshape(Cout, 9 * Cin)


def _border_masks(H, W):
    """(9, H*W) f32: 1.0 where tap (dy, dx) stays inside the image."""
    r = jnp.arange(H, dtype=jnp.int32)[:, None]
    c = jnp.arange(W, dtype=jnp.int32)[None, :]
    rows = []
    for dy, dx in _TAPS:
        m = ((r + dy >= 0) & (r + dy < H) & (c + dx >= 0) & (c + dx < W))
        rows.append(m.reshape(H * W))
    return jnp.stack(rows).astype(jnp.float32)


def block_forward(x_nchw, params):
    """Full Block forward. x_nchw: (N, C, H, W) float32 -> (N, C, H, W)."""
    N, C, H, W = x_nchw.shape
    HW = H * W
    eps = 1e-5
    # Fold batch_norm2 (used twice, matching the PyTorch forward) into affine.
    scale = params["bn2_gamma"] / jnp.sqrt(params["bn2_var"] + eps)
    bias = params["bn2_beta"] - params["bn2_mean"] * scale
    # TODO(synk): batch_norm1 is defined in __init__ but never used in forward
    # (the original module applies batch_norm2 twice); omitted.

    w1m = _pack_weight(params["conv1_w"], scale)     # (C, 9C)
    w2m = _pack_weight(params["conv2_w"], scale)     # (C, 9C)
    bias2d = bias[:, None]                           # (C, 1)
    masks = _border_masks(H, W)                      # (9, HW), constant-folded

    x_flat = x_nchw.reshape(N, C, HW)                # pure reshape, no transpose

    kern = functools.partial(fused_block_kernel, H=H, W=W, C=C)
    y_flat = pl.pallas_call(
        kern,
        out_shape=jax.ShapeDtypeStruct((N, C, HW), jnp.float32),
        grid=(N,),
        in_specs=[
            pl.BlockSpec((1, C, HW), lambda n: (n, 0, 0)),     # x (identity too)
            pl.BlockSpec((C, 9 * C), lambda n: (0, 0)),        # packed conv1 w
            pl.BlockSpec((C, 9 * C), lambda n: (0, 0)),        # packed conv2 w
            pl.BlockSpec((C, 1), lambda n: (0, 0)),            # folded-BN bias
            pl.BlockSpec((9, HW), lambda n: (0, 0)),           # border masks
        ],
        out_specs=pl.BlockSpec((1, C, HW), lambda n: (n, 0, 0)),
        scratch_shapes=[pltpu.VMEM((9 * C, HW), jnp.float32)],  # im2col patches
        compiler_params=pltpu.CompilerParams(
            dimension_semantics=("parallel",)),
    )(x_flat, w1m, w2m, bias2d, masks)
    # TODO(synk): at real ResNet sizes (C=256, H=W=64+) add a spatial grid axis
    # with halo handling and set vmem_limit_bytes so double-buffered tiles fit
    # v7x's 64 MiB VMEM.
    return y_flat.reshape(N, C, H, W)


# ----------------------------------------------------------------------------
# Pure-JAX reference (for correctness check)
# ----------------------------------------------------------------------------
def block_forward_ref(x_nchw, params):
    eps = 1e-5
    scale = params["bn2_gamma"] / jnp.sqrt(params["bn2_var"] + eps)
    bias = params["bn2_beta"] - params["bn2_mean"] * scale
    s = scale[None, :, None, None]
    b = bias[None, :, None, None]
    dn = ("NCHW", "OIHW", "NCHW")

    identity = x_nchw
    h = jax.lax.conv_general_dilated(x_nchw, params["conv1_w"], (1, 1), "SAME",
                                     dimension_numbers=dn)
    h = jnp.maximum(h * s + b, 0.0)
    y = jax.lax.conv_general_dilated(h, params["conv2_w"], (1, 1), "SAME",
                                     dimension_numbers=dn)
    y = jnp.maximum(y * s + b + identity, 0.0)
    return y


# ----------------------------------------------------------------------------
# Main
# ----------------------------------------------------------------------------
if __name__ == "__main__":
    N, C, H, W = 2, 4, 16, 16   # in_channels == out_channels, stride = 1
    key = jax.random.PRNGKey(0)
    k_x, k_w1, k_w2 = jax.random.split(key, 3)

    x = jax.random.normal(k_x, (N, C, H, W), dtype=jnp.float32)

    params = {
        # PyTorch OIHW conv weights, bias=False.
        "conv1_w": 0.1 * jax.random.normal(k_w1, (C, C, 3, 3), jnp.float32),
        "conv2_w": 0.1 * jax.random.normal(k_w2, (C, C, 3, 3), jnp.float32),
        # batch_norm2 parameters (inference-mode running stats, deterministic).
        "bn2_gamma": 1.0 + 0.1 * jnp.arange(C, dtype=jnp.float32),
        "bn2_beta": 0.05 * jnp.arange(C, dtype=jnp.float32),
        "bn2_mean": 0.01 * jnp.arange(C, dtype=jnp.float32),
        "bn2_var": 1.0 + 0.02 * jnp.arange(C, dtype=jnp.float32),
    }

    out = jax.block_until_ready(block_forward(x, params))
    ref = jax.block_until_ready(block_forward_ref(x, params))

    assert out.shape == (N, C, H, W)
    max_err = float(jnp.max(jnp.abs(out - ref)))
    assert jnp.allclose(out, ref, atol=1e-4, rtol=1e-4), max_err
    print("KERNEL_OK")
</pallas_src>

<mosaic_0001>
module attributes {stable_mosaic.version = 11 : i64} {
  func.func @fused_block_kernel(%arg0: i32, %arg1: memref<1x4x256xf32, #tpu.memory_space<vmem>>, %arg2: memref<4x36xf32, #tpu.memory_space<vmem>>, %arg3: memref<4x36xf32, #tpu.memory_space<vmem>>, %arg4: memref<4x1xf32, #tpu.memory_space<vmem>>, %arg5: memref<9x256xf32, #tpu.memory_space<vmem>>, %arg6: memref<1x4x256xf32, #tpu.memory_space<vmem>>, %arg7: memref<36x256xf32, #tpu.memory_space<vmem>>) attributes {dimension_semantics = [#tpu.dimension_semantics<parallel>], iteration_bounds = array<i64: 2>, scalar_prefetch = 0 : i64, scratch_operands = 1 : i64, tpu.core_type = #tpu.core_type<tc>, window_params = [{transform_indices = @transform_0, window_bounds = array<i64: 1, 4, 256>}, {pipeline_mode = #tpu.pipeline_mode<synchronous>, transform_indices = @transform_1, window_bounds = array<i64: 4, 36>}, {pipeline_mode = #tpu.pipeline_mode<synchronous>, transform_indices = @transform_2, window_bounds = array<i64: 4, 36>}, {pipeline_mode = #tpu.pipeline_mode<synchronous>, transform_indices = @transform_3, window_bounds = array<i64: 4, 1>}, {pipeline_mode = #tpu.pipeline_mode<synchronous>, transform_indices = @transform_4, window_bounds = array<i64: 9, 256>}, {transform_indices = @transform_5, window_bounds = array<i64: 1, 4, 256>}]} {
    %c0 = arith.constant 0 : index
    %c0_0 = arith.constant 0 : index
    %c0_1 = arith.constant 0 : index
    %0 = vector.load %arg1[%c0, %c0_0, %c0_1] : memref<1x4x256xf32, #tpu.memory_space<vmem>>, vector<1x4x256xf32>
    %1 = vector.shape_cast %0 : vector<1x4x256xf32> to vector<4x256xf32>
    %c0_2 = arith.constant 0 : index
    %c0_3 = arith.constant 0 : index
    %2 = vector.load %arg4[%c0_2, %c0_3] : memref<4x1xf32, #tpu.memory_space<vmem>>, vector<4x1xf32>
    %c17_i32 = arith.constant 17 : i32
    %3 = tpu.dynamic_rotate %1 by %c17_i32 dim 1 : vector<4x256xf32>, i32 -> vector<4x256xf32>
    %c0_4 = arith.constant 0 : index
    %c0_5 = arith.constant 0 : index
    %4 = vector.load %arg5[%c0_4, %c0_5] : memref<9x256xf32, #tpu.memory_space<vmem>>, vector<1x256xf32>
    %5 = vector.broadcast %4 : vector<1x256xf32> to vector<4x256xf32>
    %6 = arith.mulf %3, %5 : vector<4x256xf32>
    %c0_6 = arith.constant 0 : index
    %c0_7 = arith.constant 0 : index
    %7 = vector.load %arg7[%c0_6, %c0_7] : memref<36x256xf32, #tpu.memory_space<vmem>>, vector<4x256xf32>
    tpu.vector_store %arg7[%c0_6, %c0_7], %6 {strides = array<i32>} : memref<36x256xf32, #tpu.memory_space<vmem>>, vector<4x256xf32>,
    %c16_i32 = arith.constant 16 : i32
    %8 = tpu.dynamic_rotate %1 by %c16_i32 dim 1 : vector<4x256xf32>, i32 -> vector<4x256xf32>
    %c1 = arith.constant 1 : index
    %c0_8 = arith.constant 0 : index
    %9 = vector.load %arg5[%c1, %c0_8] : memref<9x256xf32, #tpu.memory_space<vmem>>, vector<1x256xf32>
    %10 = vector.broadcast %9 : vector<1x256xf32> to vector<4x256xf32>
    %11 = arith.mulf %8, %10 : vector<4x256xf32>
    %c4 = arith.constant 4 : index
    %c0_9 = arith.constant 0 : index
    %12 = vector.load %arg7[%c4, %c0_9] : memref<36x256xf32, #tpu.memory_space<vmem>>, vector<4x256xf32>
    tpu.vector_store %arg7[%c4, %c0_9], %11 {strides = array<i32>} : memref<36x256xf32, #tpu.memory_space<vmem>>, vector<4x256xf32>,
    %c15_i32 = arith.constant 15 : i32
    %13 = tpu.dynamic_rotate %1 by %c15_i32 dim 1 : vector<4x256xf32>, i32 -> vector<4x256xf32>
    %c2 = arith.constant 2 : index
    %c0_10 = arith.constant 0 : index
    %14 = vector.load %arg5[%c2, %c0_10] : memref<9x256xf32, #tpu.memory_space<vmem>>, vector<1x256xf32>
    %15 = vector.broadcast %14 : vector<1x256xf32> to vector<4x256xf32>
    %16 = arith.mulf %13, %15 : vector<4x256xf32>
    %c8 = arith.constant 8 : index
    %c0_11 = arith.constant 0 : index
    %17 = vector.load %arg7[%c8, %c0_11] : memref<36x256xf32, #tpu.memory_space<vmem>>, vector<4x256xf32>
    tpu.vector_store %arg7[%c8, %c0_11], %16 {strides = array<i32>} : memref<36x256xf32, #tpu.memory_space<vmem>>, vector<4x256xf32>,
    %c1_i32 = arith.constant 1 : i32
    %18 = tpu.dynamic_rotate %1 by %c1_i32 dim 1 : vector<4x256xf32>, i32 -> vector<4x256xf32>
    %c3 = arith.constant 3 : index
    %c0_12 = arith.constant 0 : index
    %19 = vector.load %arg5[%c3, %c0_12] : memref<9x256xf32, #tpu.memory_space<vmem>>, vector<1x256xf32>
    %20 = vector.broadcast %19 : vector<1x256xf32> to vector<4x256xf32>
    %21 = arith.mulf %18, %20 : vector<4x256xf32>
    %c12 = arith.constant 12 : index
    %c0_13 = arith.constant 0 : index
    %22 = vector.load %arg7[%c12, %c0_13] : memref<36x256xf32, #tpu.memory_space<vmem>>, vector<4x256xf32>
    tpu.vector_store %arg7[%c12, %c0_13], %21 {strides = array<i32>} : memref<36x256xf32, #tpu.memory_space<vmem>>, vector<4x256xf32>,
    %c16 = arith.constant 16 : index
    %c0_14 = arith.constant 0 : index
    %23 = vector.load %arg7[%c16, %c0_14] : memref<36x256xf32, #tpu.memory_space<vmem>>, vector<4x256xf32>
    tpu.vector_store %arg7[%c16, %c0_14], %1 {strides = array<i32>} : memref<36x256xf32, #tpu.memory_space<vmem>>, vector<4x256xf32>,
    %c255_i32 = arith.constant 255 : i32
    %24 = tpu.dynamic_rotate %1 by %c255_i32 dim 1 : vector<4x256xf32>, i32 -> vector<4x256xf32>
    %c5 = arith.constant 5 : index
    %c0_15 = arith.constant 0 : index
    %25 = vector.load %arg5[%c5, %c0_15] : memref<9x256xf32, #tpu.memory_space<vmem>>, vector<1x256xf32>
    %26 = vector.broadcast %25 : vector<1x256xf32> to vector<4x256xf32>
    %27 = arith.mulf %24, %26 : vector<4x256xf32>
    %c20 = arith.constant 20 : index
    %c0_16 = arith.constant 0 : index
    %28 = vector.load %arg7[%c20, %c0_16] : memref<36x256xf32, #tpu.memory_space<vmem>>, vector<4x256xf32>
    tpu.vector_store %arg7[%c20, %c0_16], %27 {strides = array<i32>} : memref<36x256xf32, #tpu.memory_space<vmem>>, vector<4x256xf32>,
    %c241_i32 = arith.constant 241 : i32
    %29 = tpu.dynamic_rotate %1 by %c241_i32 dim 1 : vector<4x256xf32>, i32 -> vector<4x256xf32>
    %c6 = arith.constant 6 : index
    %c0_17 = arith.constant 0 : index
    %30 = vector.load %arg5[%c6, %c0_17] : memref<9x256xf32, #tpu.memory_space<vmem>>, vector<1x256xf32>
    %31 = vector.broadcast %30 : vector<1x256xf32> to vector<4x256xf32>
    %32 = arith.mulf %29, %31 : vector<4x256xf32>
    %c24 = arith.constant 24 : index
    %c0_18 = arith.constant 0 : index
    %33 = vector.load %arg7[%c24, %c0_18] : memref<36x256xf32, #tpu.memory_space<vmem>>, vector<4x256xf32>
    tpu.vector_store %arg7[%c24, %c0_18], %32 {strides = array<i32>} : memref<36x256xf32, #tpu.memory_space<vmem>>, vector<4x256xf32>,
    %c240_i32 = arith.constant 240 : i32
    %34 = tpu.dynamic_rotate %1 by %c240_i32 dim 1 : vector<4x256xf32>, i32 -> vector<4x256xf32>
    %c7 = arith.constant 7 : index
    %c0_19 = arith.constant 0 : index
    %35 = vector.load %arg5[%c7, %c0_19] : memref<9x256xf32, #tpu.memory_space<vmem>>, vector<1x256xf32>
    %36 = vector.broadcast %35 : vector<1x256xf32> to vector<4x256xf32>
    %37 = arith.mulf %34, %36 : vector<4x256xf32>
    %c28 = arith.constant 28 : index
    %c0_20 = arith.constant 0 : index
    %38 = vector.load %arg7[%c28, %c0_20] : memref<36x256xf32, #tpu.memory_space<vmem>>, vector<4x256xf32>
    tpu.vector_store %arg7[%c28, %c0_20], %37 {strides = array<i32>} : memref<36x256xf32, #tpu.memory_space<vmem>>, vector<4x256xf32>,
    %c239_i32 = arith.constant 239 : i32
    %39 = tpu.dynamic_rotate %1 by %c239_i32 dim 1 : vector<4x256xf32>, i32 -> vector<4x256xf32>
    %c8_21 = arith.constant 8 : index
    %c0_22 = arith.constant 0 : index
    %40 = vector.load %arg5[%c8_21, %c0_22] : memref<9x256xf32, #tpu.memory_space<vmem>>, vector<1x256xf32>
    %41 = vector.broadcast %40 : vector<1x256xf32> to vector<4x256xf32>
    %42 = arith.mulf %39, %41 : vector<4x256xf32>
    %c32 = arith.constant 32 : index
    %c0_23 = arith.constant 0 : index
    %43 = vector.load %arg7[%c32, %c0_23] : memref<36x256xf32, #tpu.memory_space<vmem>>, vector<4x256xf32>
    tpu.vector_store %arg7[%c32, %c0_23], %42 {strides = array<i32>} : memref<36x256xf32, #tpu.memory_space<vmem>>, vector<4x256xf32>,
    %c0_24 = arith.constant 0 : index
    %c0_25 = arith.constant 0 : index
    %44 = vector.load %arg2[%c0_24, %c0_25] : memref<4x36xf32, #tpu.memory_space<vmem>>, vector<4x36xf32>
    %c0_26 = arith.constant 0 : index
    %c0_27 = arith.constant 0 : index
    %45 = vector.load %arg7[%c0_26, %c0_27] : memref<36x256xf32, #tpu.memory_space<vmem>>, vector<36x256xf32>
    %cst = arith.constant dense<0.000000e+00> : vector<4x256xf32>
    %46 = tpu.matmul %44, %45, %cst {dimension_numbers = #tpu.dot_dimension_numbers<[1], [0], [0], [1], [0, 0, 1, 1], [], []>} : vector<4x36xf32>, vector<36x256xf32>, vector<4x256xf32> -> vector<4x256xf32>
    %47 = vector.broadcast %2 : vector<4x1xf32> to vector<4x256xf32>
    %48 = arith.addf %46, %47 : vector<4x256xf32>
    %cst_28 = arith.constant 0.000000e+00 : f32
    %49 = vector.broadcast %cst_28 : f32 to vector<4x256xf32>
    %50 = arith.maximumf %48, %49 : vector<4x256xf32>
    %c17_i32_29 = arith.constant 17 : i32
    %51 = tpu.dynamic_rotate %50 by %c17_i32_29 dim 1 : vector<4x256xf32>, i32 -> vector<4x256xf32>
    %c0_30 = arith.constant 0 : index
    %c0_31 = arith.constant 0 : index
    %52 = vector.load %arg5[%c0_30, %c0_31] : memref<9x256xf32, #tpu.memory_space<vmem>>, vector<1x256xf32>
    %53 = vector.broadcast %52 : vector<1x256xf32> to vector<4x256xf32>
    %54 = arith.mulf %51, %53 : vector<4x256xf32>
    %c0_32 = arith.constant 0 : index
    %c0_33 = arith.constant 0 : index
    %55 = vector.load %arg7[%c0_32, %c0_33] : memref<36x256xf32, #tpu.memory_space<vmem>>, vector<4x256xf32>
    tpu.vector_store %arg7[%c0_32, %c0_33], %54 {strides = array<i32>} : memref<36x256xf32, #tpu.memory_space<vmem>>, vector<4x256xf32>,
    %c16_i32_34 = arith.constant 16 : i32
    %56 = tpu.dynamic_rotate %50 by %c16_i32_34 dim 1 : vector<4x256xf32>, i32 -> vector<4x256xf32>
    %c1_35 = arith.constant 1 : index
    %c0_36 = arith.constant 0 : index
    %57 = vector.load %arg5[%c1_35, %c0_36] : memref<9x256xf32, #tpu.memory_space<vmem>>, vector<1x256xf32>
    %58 = vector.broadcast %57 : vector<1x256xf32> to vector<4x256xf32>
    %59 = arith.mulf %56, %58 : vector<4x256xf32>
    %c4_37 = arith.constant 4 : index
    %c0_38 = arith.constant 0 : index
    %60 = vector.load %arg7[%c4_37, %c0_38] : memref<36x256xf32, #tpu.memory_space<vmem>>, vector<4x256xf32>
    tpu.vector_store %arg7[%c4_37, %c0_38], %59 {strides = array<i32>} : memref<36x256xf32, #tpu.memory_space<vmem>>, vector<4x256xf32>,
    %c15_i32_39 = arith.constant 15 : i32
    %61 = tpu.dynamic_rotate %50 by %c15_i32_39 dim 1 : vector<4x256xf32>, i32 -> vector<4x256xf32>
    %c2_40 = arith.constant 2 : index
    %c0_41 = arith.constant 0 : index
    %62 = vector.load %arg5[%c2_40, %c0_41] : memref<9x256xf32, #tpu.memory_space<vmem>>, vector<1x256xf32>
    %63 = vector.broadcast %62 : vector<1x256xf32> to vector<4x256xf32>
    %64 = arith.mulf %61, %63 : vector<4x256xf32>
    %c8_42 = arith.constant 8 : index
    %c0_43 = arith.constant 0 : index
    %65 = vector.load %arg7[%c8_42, %c0_43] : memref<36x256xf32, #tpu.memory_space<vmem>>, vector<4x256xf32>
    tpu.vector_store %arg7[%c8_42, %c0_43], %64 {strides = array<i32>} : memref<36x256xf32, #tpu.memory_space<vmem>>, vector<4x256xf32>,
    %c1_i32_44 = arith.constant 1 : i32
    %66 = tpu.dynamic_rotate %50 by %c1_i32_44 dim 1 : vector<4x256xf32>, i32 -> vector<4x256xf32>
    %c3_45 = arith.constant 3 : index
    %c0_46 = arith.constant 0 : index
    %67 = vector.load %arg5[%c3_45, %c0_46] : memref<9x256xf32, #tpu.memory_space<vmem>>, vector<1x256xf32>
    %68 = vector.broadcast %67 : vector<1x256xf32> to vector<4x256xf32>
    %69 = arith.mulf %66, %68 : vector<4x256xf32>
    %c12_47 = arith.constant 12 : index
    %c0_48 = arith.constant 0 : index
    %70 = vector.load %arg7[%c12_47, %c0_48] : memref<36x256xf32, #tpu.memory_space<vmem>>, vector<4x256xf32>
    tpu.vector_store %arg7[%c12_47, %c0_48], %69 {strides = array<i32>} : memref<36x256xf32, #tpu.memory_space<vmem>>, vector<4x256xf32>,
    %c16_49 = arith.constant 16 : index
    %c0_50 = arith.constant 0 : index
    %71 = vector.load %arg7[%c16_49, %c0_50] : memref<36x256xf32, #tpu.memory_space<vmem>>, vector<4x256xf32>
    tpu.vector_store %arg7[%c16_49, %c0_50], %50 {strides = array<i32>} : memref<36x256xf32, #tpu.memory_space<vmem>>, vector<4x256xf32>,
    %c255_i32_51 = arith.constant 255 : i32
    %72 = tpu.dynamic_rotate %50 by %c255_i32_51 dim 1 : vector<4x256xf32>, i32 -> vector<4x256xf32>
    %c5_52 = arith.constant 5 : index
    %c0_53 = arith.constant 0 : index
    %73 = vector.load %arg5[%c5_52, %c0_53] : memref<9x256xf32, #tpu.memory_space<vmem>>, vector<1x256xf32>
    %74 = vector.broadcast %73 : vector<1x256xf32> to vector<4x256xf32>
    %75 = arith.mulf %72, %74 : vector<4x256xf32>
    %c20_54 = arith.constant 20 : index
    %c0_55 = arith.constant 0 : index
    %76 = vector.load %arg7[%c20_54, %c0_55] : memref<36x256xf32, #tpu.memory_space<vmem>>, vector<4x256xf32>
    tpu.vector_store %arg7[%c20_54, %c0_55], %75 {strides = array<i32>} : memref<36x256xf32, #tpu.memory_space<vmem>>, vector<4x256xf32>,
    %c241_i32_56 = arith.constant 241 : i32
    %77 = tpu.dynamic_rotate %50 by %c241_i32_56 dim 1 : vector<4x256xf32>, i32 -> vector<4x256xf32>
    %c6_57 = arith.constant 6 : index
    %c0_58 = arith.constant 0 : index
    %78 = vector.load %arg5[%c6_57, %c0_58] : memref<9x256xf32, #tpu.memory_space<vmem>>, vector<1x256xf32>
    %79 = vector.broadcast %78 : vector<1x256xf32> to vector<4x256xf32>
    %80 = arith.mulf %77, %79 : vector<4x256xf32>
    %c24_59 = arith.constant 24 : index
    %c0_60 = arith.constant 0 : index
    %81 = vector.load %arg7[%c24_59, %c0_60] : memref<36x256xf32, #tpu.memory_space<vmem>>, vector<4x256xf32>
    tpu.vector_store %arg7[%c24_59, %c0_60], %80 {strides = array<i32>} : memref<36x256xf32, #tpu.memory_space<vmem>>, vector<4x256xf32>,
    %c240_i32_61 = arith.constant 240 : i32
    %82 = tpu.dynamic_rotate %50 by %c240_i32_61 dim 1 : vector<4x256xf32>, i32 -> vector<4x256xf32>
    %c7_62 = arith.constant 7 : index
    %c0_63 = arith.constant 0 : index
    %83 = vector.load %arg5[%c7_62, %c0_63] : memref<9x256xf32, #tpu.memory_space<vmem>>, vector<1x256xf32>
    %84 = vector.broadcast %83 : vector<1x256xf32> to vector<4x256xf32>
    %85 = arith.mulf %82, %84 : vector<4x256xf32>
    %c28_64 = arith.constant 28 : index
    %c0_65 = arith.constant 0 : index
    %86 = vector.load %arg7[%c28_64, %c0_65] : memref<36x256xf32, #tpu.memory_space<vmem>>, vector<4x256xf32>
    tpu.vector_store %arg7[%c28_64, %c0_65], %85 {strides = array<i32>} : memref<36x256xf32, #tpu.memory_space<vmem>>, vector<4x256xf32>,
    %c239_i32_66 = arith.constant 239 : i32
    %87 = tpu.dynamic_rotate %50 by %c239_i32_66 dim 1 : vector<4x256xf32>, i32 -> vector<4x256xf32>
    %c8_67 = arith.constant 8 : index
    %c0_68 = arith.constant 0 : index
    %88 = vector.load %arg5[%c8_67, %c0_68] : memref<9x256xf32, #tpu.memory_space<vmem>>, vector<1x256xf32>
    %89 = vector.broadcast %88 : vector<1x256xf32> to vector<4x256xf32>
    %90 = arith.mulf %87, %89 : vector<4x256xf32>
    %c32_69 = arith.constant 32 : index
    %c0_70 = arith.constant 0 : index
    %91 = vector.load %arg7[%c32_69, %c0_70] : memref<36x256xf32, #tpu.memory_space<vmem>>, vector<4x256xf32>
    tpu.vector_store %arg7[%c32_69, %c0_70], %90 {strides = array<i32>} : memref<36x256xf32, #tpu.memory_space<vmem>>, vector<4x256xf32>,
    %c0_71 = arith.constant 0 : index
    %c0_72 = arith.constant 0 : index
    %92 = vector.load %arg3[%c0_71, %c0_72] : memref<4x36xf32, #tpu.memory_space<vmem>>, vector<4x36xf32>
    %c0_73 = arith.constant 0 : index
    %c0_74 = arith.constant 0 : index
    %93 = vector.load %arg7[%c0_73, %c0_74] : memref<36x256xf32, #tpu.memory_space<vmem>>, vector<36x256xf32>
    %cst_75 = arith.constant dense<0.000000e+00> : vector<4x256xf32>
    %94 = tpu.matmul %92, %93, %cst_75 {dimension_numbers = #tpu.dot_dimension_numbers<[1], [0], [0], [1], [0, 0, 1, 1], [], []>} : vector<4x36xf32>, vector<36x256xf32>, vector<4x256xf32> -> vector<4x256xf32>
    %95 = vector.broadcast %2 : vector<4x1xf32> to vector<4x256xf32>
    %96 = arith.addf %94, %95 : vector<4x256xf32>
    %97 = arith.addf %96, %1 : vector<4x256xf32>
    %cst_76 = arith.constant 0.000000e+00 : f32
    %98 = vector.broadcast %cst_76 : f32 to vector<4x256xf32>
    %99 = arith.maximumf %97, %98 : vector<4x256xf32>
    %c0_77 = arith.constant 0 : index
    %c0_78 = arith.constant 0 : index
    %c0_79 = arith.constant 0 : index
    %100 = vector.load %arg6[%c0_77, %c0_78, %c0_79] : memref<1x4x256xf32, #tpu.memory_space<vmem>>, vector<1x4x256xf32>
    %101 = vector.shape_cast %100 : vector<1x4x256xf32> to vector<4x256xf32>
    %102 = vector.shape_cast %99 : vector<4x256xf32> to vector<1x4x256xf32>
    tpu.vector_store %arg6[%c0_77, %c0_78, %c0_79], %102 {strides = array<i32>} : memref<1x4x256xf32, #tpu.memory_space<vmem>>, vector<1x4x256xf32>,
    return
  }
  func.func @transform_0(%arg0: i32) -> (i32, i32, i32) {
    %c0_i32 = arith.constant 0 : i32
    %c0_i32_0 = arith.constant 0 : i32
    %c0_i32_1 = arith.constant 0 : i32
    return %arg0, %c0_i32, %c0_i32_0 : i32, i32, i32
  }
  func.func @transform_1(%arg0: i32) -> (i32, i32) {
    %c0_i32 = arith.constant 0 : i32
    %c0_i32_0 = arith.constant 0 : i32
    %c0_i32_1 = arith.constant 0 : i32
    return %c0_i32, %c0_i32_0 : i32, i32
  }
  func.func @transform_2(%arg0: i32) -> (i32, i32) {
    %c0_i32 = arith.constant 0 : i32
    %c0_i32_0 = arith.constant 0 : i32
    %c0_i32_1 = arith.constant 0 : i32
    return %c0_i32, %c0_i32_0 : i32, i32
  }
  func.func @transform_3(%arg0: i32) -> (i32, i32) {
    %c0_i32 = arith.constant 0 : i32
    %c0_i32_0 = arith.constant 0 : i32
    %c0_i32_1 = arith.constant 0 : i32
    return %c0_i32, %c0_i32_0 : i32, i32
  }
  func.func @transform_4(%arg0: i32) -> (i32, i32) {
    %c0_i32 = arith.constant 0 : i32
    %c0_i32_0 = arith.constant 0 : i32
    %c0_i32_1 = arith.constant 0 : i32
    return %c0_i32, %c0_i32_0 : i32, i32
  }
  func.func @transform_5(%arg0: i32) -> (i32, i32, i32) {
    %c0_i32 = arith.constant 0 : i32
    %c0_i32_0 = arith.constant 0 : i32
    %c0_i32_1 = arith.constant 0 : i32
    return %arg0, %c0_i32, %c0_i32_0 : i32, i32, i32
  }
}

</mosaic_0001>

<bundles_post_ra>
// kernel: tpu_custom_call.1
= control target key start
LH: loop header
LB: loop body
LE: loop exit
PB: predicated region body
PF: predicated region fallthrough
CT: control target
= control target key end

     0   :  { %10 = vsyncpa [#allocation4], 0  ;;  %s1652_s0 = inlined_call_operand.hbm [shape: f32[2,4,256], index: 0, kind: input, shape index: {}]   ;;  %s1653_s1 = inlined_call_operand.vmem [shape: f32[4,36], index: 1, kind: input, shape index: {}]   ;;  %s1654_s2 = inlined_call_operand.vmem [shape: f32[4,36], index: 2, kind: input, shape index: {}]   ;;  %s1655_s3 = inlined_call_operand.vmem [shape: f32[4,1], index: 3, kind: input, shape index: {}]   ;;  %s1656_s4 = inlined_call_operand.hbm [shape: f32[9,256], index: 4, kind: input, shape index: {}]   ;;  %s1657_s5 = inlined_call_operand.hbm [shape: f32[2,4,256], index: 5, kind: output, shape index: {}]  }
   0x1   :  { %12 = vsyncpa [#allocation4 + $0x1], 0 }
   0x2   :  { %13 = vsyncpa [#allocation7], 0 }
   0x3   :  { %14 = vsyncpa [#allocation5], 0 }
   0x4   :  { %16 = vsyncpa [#allocation5 + $0x1], 0  ;;  %s1263_s18 = smov 0   ;;  %s1265_s19 = smov 0  }
   0x5   :  { %s1267_s20 = smov 0   ;;  %s1269_s21 = smov 0  }
   0x6 LB: > { %s1284_s22 = sadd.s32 4294967295, %s1216_s21   ;;  %s977_s23 = sadd.s32 4294967294, %s1216_s21   ;;  %s1216_s21 = sphi %s1269_s21, %s1677_s21   ;;  %s1212_s20 = sphi %s1267_s20, %s1676_s20   ;;  %s1208_s19 = sphi %s1265_s19, %s1675_s19   ;;  %s1204_s18 = sphi %s1263_s18, %s1674_s18  }
   0x7   : > { %p42_p0 = scmp.ne.s32.totalorder %s1208_s19, %s1204_s18  ;;  %p1658_p1 = scmp.eq.s32.totalorder %s1284_s22, 0 }
   0x8   : > { %p156_p3 = scmp.eq.s32.totalorder %s977_s23, 1  ;;  %p978_p5 = scmp.ge.s32.totalorder %s1216_s21, 1 }
   0x9   : > { %p1293_p4 = por %p1658_p1, %p42_p0  ;;  %p163_p7 = scmp.lt.s32.totalorder %s1216_s21, 3 }
   0xa   : > { %p1298_p6 = por %p156_p3, %p42_p0  ;;  %s1218_s27 = smov [#allocation6]  }
   0xb   : > { %s1661_s24 = scalar_select %p1293_p4, 1, 0 }
   0xc   : > { %s1662_s25 = scalar_select %p1298_p6, 1, 0 }
   0xd   : > { %p1303_p8 = pnand %p978_p5, %p163_p7  ;;  %s184_s28 = sshll.u32 %s1218_s27, 4  ;;  %s1307_s28 = int_to_ptr.vmem [resolvable:$true] %s184_s28 }
   0xe   : > { %s1319_s30 = sadd.s32 1, %s1216_s21   ;;  %s29_s6 = sadd.s32 1, %s1212_s20 }
   0xf   : > { %s1663_s26 = scalar_select %p1303_p8, 1, 0 }
  0x10   : > { %p1025_p9 = pneg %p1303_p8  ;;  %s26_s7 = ssub.s32 %s1216_s21, %s1319_s30 }
  0x11   : > { %s1088_s10 = scalar_lea.hbm %s1656_s4, 512 }
  0x12   : > { %p1314_p11 = pnand %p1025_p9, %p1658_p1  ;;  %p1089_p12 = scmp.ne.s32.totalorder %s1656_s4, %s1088_s10 }
  0x13   : > { %p1095_p5 = scmp.lt.u32.totalorder %s1088_s10, %s1656_s4 }
  0x14   : > { %p1090_p13 = pneg %p1314_p11 }
  0x16   : > { %p1091_p0 = pnand %p1090_p13, %p1089_p12 }
  0x18   : > { %p1092_p3 = pneg %p1091_p0 }
  0x1a   : > { %p1097_p7 = pnand %p1095_p5, %p1092_p3 }
  0x1c   : > { %1100 = shalt.err (!%p1097_p7)
}
  0x1d   : > { %s1101_s15 = scalar_lea.vmem %s1307_s28, 512  ;;  %p1109_p2 = scmp.lt.s32.totalorder %s1307_s28, %s1307_s28 }
  0x1e   : > { %p1102_p9 = scmp.ne.s32.totalorder %s1307_s28, %s1101_s15  ;;  %p1110_p6 = scmp.lt.s32.totalorder %s1101_s15, %s1101_s15 }
  0x20   : > { %p1104_p10 = pnand %p1102_p9, %p1090_p13  ;;  %p1111_p4 = por %p1110_p6, %p1109_p2 }
  0x22   : > { %p1105_p1 = pneg %p1104_p10 }
  0x24   : > { %p1112_p8 = pnand %p1111_p4, %p1105_p1 }
  0x26   : > { %1115 = shalt.err (!%p1112_p8)
}
  0x27   : > { %s1219_s16 = smov 256   ;;  %s1220_s17 = smov 16  }
  0x28   : > { %1028 = dma.hbm_to_vmem [thread:$0]  (!%p1314_p11), %s1656_s4, 512, %s1307_s28, [#allocation7], %s1219_s16, %s1219_s16, %s1220_s17  }
  0x29   : > { %p27_p2 = scmp.eq.s32.totalorder %s26_s7, 0  ;;  %p36_p1 = scmp.ne.s32.totalorder %s1212_s20, %s1208_s19 }
  0x2a   : > { %p37_p4 = scmp.eq.s32.totalorder %s1216_s21, 0  ;;  %p1038_p6 = scmp.lt.s32.totalorder %s1216_s21, 2 }
  0x2b   : > { %s1350_s8 = scalar_select %p27_p2, %s1212_s20, %s29_s6  }
  0x2c   : > { %p38_p8 = por %p37_p4, %p36_p1  ;;  %p1665_p10 = scmp.eq.s32.totalorder %s1284_s22, 1 }
  0x2d   : > { %s198_s10 = sand.u32 1, %s1212_s20   ;;  %s999_s11 = sshll.u32 %s1216_s21, 7 }
  0x2e   : > { %p1354_p12 = por %p1665_p10, %p36_p1  ;;  %s981_s12 = sshll.u32 %s198_s10, 3 }
  0x2f   : > { %s1363_s14 = scalar_lea.hbm %s1652_s0, %s999_s11  ;;  %s202_s28 = scalar_lea.vmem [#allocation3], %s981_s12 }
  0x30   : > { %s210_s6 = sshll.u32 %s202_s28, 4  ;;  %p1365_p11 = pnand %p1038_p6, %p38_p8  ;;  %s1369_s6 = int_to_ptr.vmem [resolvable:$true] %s210_s6 }
  0x31   : > { %s199_s15 = scalar_lea.sflag [#allocation4], %s198_s10  ;;  %s1116_s16 = scalar_lea.hbm %s1363_s14, 128 }
  0x32   : > { %p1117_p13 = scmp.ne.s32.totalorder %s1363_s14, %s1116_s16  ;;  %p1118_p0 = pneg %p1365_p11 }
  0x33   : > { %s1121_s27 = scalar_lea.hbm %s1652_s0, 256  ;;  %p1122_p7 = scmp.lt.u32.totalorder %s1363_s14, %s1652_s0 }
  0x34   : > { %p1119_p3 = pnand %p1118_p0, %p1117_p13  ;;  %p1123_p9 = scmp.lt.u32.totalorder %s1121_s27, %s1116_s16 }
  0x35   : > { %p1125_p1 = scmp.lt.u32.totalorder %s1116_s16, %s1363_s14 }
  0x36   : > { %p1120_p5 = pneg %p1119_p3  ;;  %p1124_p2 = por %p1123_p9, %p1122_p7 }
  0x38   : > { %p1126_p4 = por %p1125_p1, %p1124_p2 }
  0x3a   : > { %p1127_p6 = pnand %p1126_p4, %p1120_p5 }
  0x3c   : > { %1130 = shalt.err (!%p1127_p6)
}
  0x3d   : > { %s1131_s10 = scalar_lea.vmem %s1369_s6, 128  ;;  %s1221_s29 = smov [#allocation3]  }
  0x3e   : > { %p1132_p8 = scmp.ne.s32.totalorder %s1369_s6, %s1131_s10  ;;  %s1136_s13 = sshll.u32 %s1221_s29, 4  ;;  %s1137_s13 = int_to_ptr.vmem [resolvable:$false] %s1136_s13 }
  0x3f   : > { %s1138_s28 = scalar_lea.vmem %s1137_s13, 256  ;;  %p1139_p3 = scmp.lt.s32.totalorder %s1369_s6, %s1137_s13 }
  0x40   : > { %p1134_p10 = pnand %p1132_p8, %p1118_p0  ;;  %p1140_p7 = scmp.lt.s32.totalorder %s1138_s28, %s1131_s10 }
  0x42   : > { %p1135_p13 = pneg %p1134_p10  ;;  %p1141_p9 = por %p1140_p7, %p1139_p3 }
  0x44   : > { %p1142_p2 = pnand %p1141_p9, %p1135_p13 }
  0x46   : > { %1145 = shalt.err (!%p1142_p2)
}
  0x47   : > { %1032 = dma.hbm_to_vmem [thread:$0]  (!%p1365_p11), %s1363_s14, 128, %s1369_s6, %s199_s15  }
  0x48   : > { %p1668_p5 = scmp.ne.s32.totalorder %s1663_s26, 0 }
  0x49   : > { %s1399_s16 = sand.u32 (!%p1668_p5), 1, %s1208_s19   ;;  %p1669_p0 = scmp.ne.s32.totalorder (!%p1668_p5), %s1661_s24, 0 }
  0x4a   : > { %219 = sbr.rel (%p1668_p5) target bundleno = 857 (0x359), region = 40  ;;  %s985_s17 = sshll.u32 (!%p1668_p5), %s1399_s16, 3 }
  0x4b   : > { %s222_s23 = scalar_lea.sflag (!%p1668_p5), [#allocation4], %s1399_s16  ;;  %s225_s27 = scalar_lea.vmem (!%p1668_p5), [#allocation3], %s985_s17 }
  0x51   : > { %1191 = dma.done.wait (%p1669_p0), %s222_s23, 128  }
  0x52   : > { %1193 = vsyncadd (%p1669_p0), %s222_s23, 4294967168  ;;  %p1670_p11 = scmp.eq.s32.totalorder %s1284_s22, 0 }
  0x54   : > { %1195 = dma.done.wait (%p1670_p11), [#allocation7], 512   ;;  %p1671_p1 = pmov %p1670_p11 }
  0x55   : > { %v1413_v0 = vld [vmem:[%s225_s27] sm:$0xff]  ;;  %s1222_s26 = smov 1   ;;  %s1223_s14 = smov 16   ;;  %v1230_v2 = vmov 0.0   ;;  %v257_v3 = vld [vmem:[%s1655_s3] sm:$0xf]  ;;  %v265_v5 = vlaneseq }
  0x56   : > { %1197 = vsyncadd (%p1671_p1), [#allocation7], 4294966784  ;;  %340 = vrot.lane.b32.xlu1 %v1413_v0, %s1222_s26  ;;  %370 = vst [vmem:[#allocation2 + $0x20] sm:$0xf] %v1413_v0  ;;  %286 = vrot.lane.b32.xlu0 %v1413_v0, %s1223_s14  ;;  %v1422_v1 = vcombine.high %v1413_v0, %v1413_v0  ;;  %s1224_s24 = smov 17   ;;  %s1225_s6 = smov 15  }
  0x57   : > { %s1226_s7 = smov 127   ;;  %s1227_s15 = smov 112   ;;  %571 = vmatprep.mubr.f32.mxu0 %v1230_v2  ;;  %866 = vmatprep.mubr.f32.mxu1 %v1230_v2  ;;  %v1231_v4 = vmov 0   ;;  %v273_v6 = vshrl.u32 %v265_v5, 7  ;;  %v1456_v7 = vand.u32 127, %v265_v5  ;;  %vm500_vm8 = vcmask 1043456  }
  0x58   : > { %371 = vst [vmem:[#allocation2 + $0x28] sm:$0xf] %v1422_v1  ;;  %s1228_s11 = smov 113   ;;  %s1229_s12 = smov 111   ;;  %1086 = vset.pattern.permute.xlu0 %v1231_v4  ;;  %vm496_vm9 = vcmask 293888  }
  0x59   : > { %v1458_v8 = vsub.s32 0, %v273_v6  ;;  %v1460_v9 = vsub.s32 1, %v273_v6  ;;  %v348_v10 = vld [vmem:[#allocation6 + $0x3] ss:$8 sm:$0x3]  ;;  %vm344_vm0 = vcmp.lt.s32.totalorder %v1456_v7, 1 }
  0x5a   : > { %261 = vrot.lane.b32.xlu0 %v1413_v0, %s1224_s24  ;;  %342 = vrot.lane.b32.xlu1 %v1422_v1, %s1222_s26  ;;  %v270_v15 = vld [vmem:[#allocation6] ss:$8 sm:$0x3]  ;;  %v294_v16 = vld [vmem:[#allocation6 + $0x1] ss:$8 sm:$0x3] }
  0x5b   : > { %v353_v13 = vrot.slane %v348_v10, %v1458_v8  ;;  %v357_v14 = vrot.slane %v348_v10, %v1460_v9  ;;  %vm267_vm1 = vcmp.lt.s32.totalorder %v1456_v7, 17  ;;  %vm290_vm2 = vcmp.lt.s32.totalorder %v1456_v7, 16  ;;  %v324_v23 = vld [vmem:[#allocation6 + $0x2] ss:$8 sm:$0x3] }
  0x5c   : > { %v275_v21 = vrot.slane %v270_v15, %v1458_v8  ;;  %v279_v22 = vrot.slane %v270_v15, %v1460_v9  ;;  %v299_v26 = vrot.slane %v294_v16, %v1458_v8  ;;  %v303_v27 = vrot.slane %v294_v16, %v1460_v9  ;;  %v380_v42 = vld [vmem:[#allocation6 + $0x5] ss:$8 sm:$0x3]  ;;  %v434_v53 = vld [vmem:[#allocation6 + $0x7] ss:$8 sm:$0x3] }
  0x5d   : > { %vm320_vm3 = vcmp.lt.s32.totalorder %v1456_v7, 15  ;;  %v329_v32 = vrot.slane %v324_v23, %v1458_v8  ;;  %v333_v33 = vrot.slane %v324_v23, %v1460_v9  ;;  %vm376_vm4 = vcmp.lt.s32.totalorder %v1456_v7, 127  ;;  %v410_v62 = vld [vmem:[#allocation6 + $0x6] ss:$8 sm:$0x3] }
  0x5e   : > { %263 = vrot.lane.b32.xlu1 %v1422_v1, %s1224_s24  ;;  %288 = vrot.lane.b32.xlu0 %v1422_v1, %s1223_s14  ;;  %v385_v51 = vrot.slane %v380_v42, %v1458_v8  ;;  %v389_v52 = vrot.slane %v380_v42, %v1460_v9  ;;  %vm430_vm5 = vcmp.lt.s32.totalorder %v1456_v7, 112  ;;  %v439_v60 = vrot.slane %v434_v53, %v1458_v8  ;;  %v464_v15 = vld [vmem:[#allocation6 + $0x10] ss:$8 sm:$0x3] }
  0x5f   : > { %v443_v61 = vrot.slane %v434_v53, %v1460_v9  ;;  %vm406_vm6 = vcmp.lt.s32.totalorder %v1456_v7, 113  ;;  %vm460_vm7 = vcmp.lt.s32.totalorder %v1456_v7, 111  ;;  %v608_v53 = vld [vmem:[#allocation6 + $0x1] ss:$8 sm:$0x3] }
  0x60   : > { %v782_v7 = vld [vmem:[%s1654_s2] sm:$0xf] }
  0x62   : > { %318 = vrot.lane.b32.xlu1 %v1422_v1, %s1225_s6  ;;  %316 = vrot.lane.b32.xlu0 %v1413_v0, %s1225_s6 }
  0x66   : > { %374 = vrot.lane.b32.xlu1 %v1422_v1, %s1226_s7  ;;  %372 = vrot.lane.b32.xlu0 %v1413_v0, %s1226_s7 }
  0x6a   : > { %428 = vrot.lane.b32.xlu1 %v1422_v1, %s1227_s15  ;;  %426 = vrot.lane.b32.xlu0 %v1413_v0, %s1227_s15 }
  0x6e   : > { %404 = vrot.lane.b32.xlu1 %v1422_v1, %s1228_s11  ;;  %402 = vrot.lane.b32.xlu0 %v1413_v0, %s1228_s11 }
  0x72   : > { %458 = vrot.lane.b32.xlu1 %v1422_v1, %s1229_s12  ;;  %456 = vrot.lane.b32.xlu0 %v1413_v0, %s1229_s12 }
  0x76   : > { %493 = vperm.xlu0 %1086, %v257_v3  }
  0xc8   : > { %v341_v11 = vpop.permute.xlu1 %340  ;;  %v287_v12 = vpop.permute.xlu0 %286 }
  0xcc   : > { %v262_v17 = vpop.permute.xlu0 %261  ;;  %v343_v18 = vpop.permute.xlu1 %342 }
  0xcd   : > { %v345_v19 = vsel %vm344_vm0, %v341_v11, %v343_v18  ;;  %v346_v20 = vsel %vm344_vm0, %v343_v18, %v341_v11 }
  0xce   : > { %v360_v24 = vmul.f32 %v353_v13, %v346_v20  ;;  %v361_v25 = vmul.f32 %v357_v14, %v345_v19  ;;  %v419_v13 = vrot.slane %v410_v62, %v1460_v9 }
  0xd0   : > { %v364_v28 = vrot.slane %v360_v24, 4  ;;  %v365_v29 = vrot.slane %v361_v25, 4  ;;  %v264_v30 = vpop.permute.xlu1 %263  ;;  %v289_v31 = vpop.permute.xlu0 %288 }
  0xd1   : > { %v268_v34 = vsel %vm267_vm1, %v262_v17, %v264_v30  ;;  %v269_v35 = vsel %vm267_vm1, %v264_v30, %v262_v17  ;;  %v291_v36 = vsel %vm290_vm2, %v287_v12, %v289_v31  ;;  %v292_v37 = vsel %vm290_vm2, %v289_v31, %v287_v12 }
  0xd2   : > { %368 = vst [vmem:[#allocation2 + $0x10] sm:$0xf0] %v364_v28  ;;  %369 = vst [vmem:[#allocation2 + $0x18] sm:$0xf0] %v365_v29  ;;  %v282_v38 = vmul.f32 %v275_v21, %v269_v35  ;;  %v283_v39 = vmul.f32 %v279_v22, %v268_v34  ;;  %v306_v40 = vmul.f32 %v299_v26, %v292_v37 }
  0xd3   : > { %v307_v41 = vmul.f32 %v303_v27, %v291_v36  ;;  %v415_v12 = vrot.slane %v410_v62, %v1458_v8  ;;  %v469_v29 = vrot.slane %v464_v15, %v1458_v8  ;;  %v473_v30 = vrot.slane %v464_v15, %v1460_v9 }
  0xd4   : > { %284 = vst [vmem:[#allocation2] sm:$0xf] %v282_v38  ;;  %285 = vst [vmem:[#allocation2 + $0x8] sm:$0xf] %v283_v39  ;;  %v310_v43 = vrot.slane %v306_v40, 4  ;;  %v319_v45 = vpop.permute.xlu1 %318  ;;  %v317_v46 = vpop.permute.xlu0 %316 }
  0xd5   : > { %v311_v44 = vrot.slane %v307_v41, 4  ;;  %v321_v47 = vsel %vm320_vm3, %v317_v46, %v319_v45  ;;  %v322_v48 = vsel %vm320_vm3, %v319_v45, %v317_v46  ;;  %v480_v45 = vld [vmem:[%s1653_s1] sm:$0xf] }
  0xd6   : > { %314 = vst [vmem:[#allocation2] sm:$0xf0] %v310_v43  ;;  %v336_v49 = vmul.f32 %v329_v32, %v322_v48  ;;  %v337_v50 = vmul.f32 %v333_v33, %v321_v47 }
  0xd7   : > { %315 = vst [vmem:[#allocation2 + $0x8] sm:$0xf0] %v311_v44 }
  0xd8   : > { %338 = vst [vmem:[#allocation2 + $0x10] sm:$0xf] %v336_v49  ;;  %339 = vst [vmem:[#allocation2 + $0x18] sm:$0xf] %v337_v50  ;;  %v375_v54 = vpop.permute.xlu1 %374  ;;  %v373_v55 = vpop.permute.xlu0 %372 }
  0xd9   : > { %v377_v56 = vsel %vm376_vm4, %v373_v55, %v375_v54  ;;  %v378_v57 = vsel %vm376_vm4, %v375_v54, %v373_v55 }
  0xda   : > { %v392_v58 = vmul.f32 %v385_v51, %v377_v56  ;;  %v393_v59 = vmul.f32 %v389_v52, %v378_v57  ;;  %v613_v56 = vrot.slane %v608_v53, %v1458_v8  ;;  %v617_v57 = vrot.slane %v608_v53, %v1460_v9 }
  0xdc   : > { %v396_v63 = vrot.slane %v392_v58, 4  ;;  %v397_v2 = vrot.slane %v393_v59, 4  ;;  %v429_v3 = vpop.permute.xlu1 %428  ;;  %v427_v4 = vpop.permute.xlu0 %426  ;;  %v658_v58 = vld [vmem:[#allocation6 + $0x3] ss:$8 sm:$0x3] }
  0xdd   : > { %v431_v5 = vsel %vm430_vm5, %v427_v4, %v429_v3  ;;  %v432_v6 = vsel %vm430_vm5, %v429_v3, %v427_v4  ;;  %v481_v17 = vld [vmem:[#allocation2] sm:$0xff]  ;;  %v663_v3 = vrot.slane %v658_v58, %v1458_v8  ;;  %v667_v4 = vrot.slane %v658_v58, %v1460_v9 }
  0xde   : > { %400 = vst [vmem:[#allocation2 + $0x20] sm:$0xf0] %v396_v63  ;;  %401 = vst [vmem:[#allocation2 + $0x28] sm:$0xf0] %v397_v2  ;;  %v446_v10 = vmul.f32 %v439_v60, %v431_v5  ;;  %v447_v11 = vmul.f32 %v443_v61, %v432_v6  ;;  %v482_v14 = vld [vmem:[#allocation2 + $0x8] sm:$0xff] }
  0xdf   : > { %v484_v16 = vld [vmem:[#allocation2 + $0x18] sm:$0xff]  ;;  %v483_v18 = vld [vmem:[#allocation2 + $0x10] sm:$0xff]  ;;  %v586_v5 = vld [vmem:[#allocation6] ss:$8 sm:$0x3] }
  0xe0   : > { %v450_v19 = vrot.slane %v446_v10, 4  ;;  %v451_v20 = vrot.slane %v447_v11, 4  ;;  %v405_v21 = vpop.permute.xlu1 %404  ;;  %v403_v22 = vpop.permute.xlu0 %402  ;;  %v1001_v23 = vpack.c.bf16 %v484_v16, %v482_v14  ;;  %v1003_v24 = vpack.c.bf16 %v483_v18, %v481_v17 }
  0xe1   : > { %v407_v25 = vsel %vm406_vm6, %v403_v22, %v405_v21  ;;  %v408_v26 = vsel %vm406_vm6, %v405_v21, %v403_v22  ;;  %v591_v17 = vrot.slane %v586_v5, %v1458_v8  ;;  %v595_v18 = vrot.slane %v586_v5, %v1460_v9 }
  0xe2   : > { %454 = vst [vmem:[#allocation2 + $0x30] sm:$0xf0] %v450_v19  ;;  %455 = vst [vmem:[#allocation2 + $0x38] sm:$0xf0] %v451_v20  ;;  %v422_v27 = vmul.f32 %v415_v12, %v407_v25  ;;  %v423_v28 = vmul.f32 %v419_v13, %v408_v26  ;;  %1002 = vmatprep.subr.bf16.mxu0 %v1001_v23 }
  0xe3   : > { %1004 = vmatpush1.bf16.msra.mxu0 %v1003_v24  ;;  %v636_v19 = vld [vmem:[#allocation6 + $0x2] ss:$8 sm:$0x3] }
  0xe4   : > { %424 = vst [vmem:[#allocation2 + $0x30] sm:$0xf] %v422_v27  ;;  %425 = vst [vmem:[#allocation2 + $0x38] sm:$0xf] %v423_v28  ;;  %v459_v31 = vpop.permute.xlu1 %458  ;;  %v457_v32 = vpop.permute.xlu0 %456  ;;  %v641_v28 = vrot.slane %v636_v19, %v1458_v8 }
  0xe5   : > { %v461_v33 = vsel %vm460_vm7, %v457_v32, %v459_v31  ;;  %v462_v34 = vsel %vm460_vm7, %v459_v31, %v457_v32  ;;  %v486_v37 = vld [vmem:[#allocation2 + $0x28] sm:$0xff]  ;;  %v485_v39 = vld [vmem:[#allocation2 + $0x20] sm:$0xff] }
  0xe6   : > { %v476_v35 = vmul.f32 %v469_v29, %v461_v33  ;;  %v477_v36 = vmul.f32 %v473_v30, %v462_v34  ;;  %v645_v29 = vrot.slane %v636_v19, %v1460_v9  ;;  %v688_v30 = vld [vmem:[#allocation6 + $0x5] ss:$8 sm:$0x3] }
  0xe8   : > { %478 = vst [vmem:[#allocation2 + $0x40] sm:$0xf] %v476_v35  ;;  %479 = vst [vmem:[#allocation2 + $0x48] sm:$0xf] %v477_v36  ;;  %v693_v36 = vrot.slane %v688_v30, %v1458_v8 }
  0xeb   : > { %v488_v38 = vld [vmem:[#allocation2 + $0x38] sm:$0xff]  ;;  %v487_v40 = vld [vmem:[#allocation2 + $0x30] sm:$0xff] }
  0xec   : > { %v1005_v41 = vpack.c.bf16 %v488_v38, %v486_v37  ;;  %v1007_v42 = vpack.c.bf16 %v487_v40, %v485_v39  ;;  %v697_v37 = vrot.slane %v688_v30, %v1460_v9  ;;  %v738_v38 = vld [vmem:[#allocation6 + $0x7] ss:$8 sm:$0x3] }
  0xee   : > { %1006 = vmatprep.subr.bf16.mxu0 %v1005_v41 }
  0xef   : > { %1008 = vmatpush1.bf16.msra.mxu0 %v1007_v42  ;;  %v490_v43 = vld [vmem:[#allocation2 + $0x48] sm:$0xf]  ;;  %v489_v44 = vld [vmem:[#allocation2 + $0x40] sm:$0xf] }
  0xf0   : > { %988 = vmatprep.subr.msk.mxu0 %vm500_vm8, %v490_v43 }
  0xf3   : > { %989 = vmatpush1.msk.msra.mxu0 %vm500_vm8, %v489_v44 }
  0xf4   : > { %990 = vmatmul.mubr.msk.f32.vlgmr.msra.gmra.mrb[0].mxu0 %vm496_vm9, %v480_v45  ;;  %v743_v45 = vrot.slane %v738_v38, %v1458_v8 }
  0xf5   : > { %v1524_v46 = vpop.permute.xlu0 %493 }
 0x1c7   : > { %v573_v47 = vpop.f32.mrb[0].mxu0 }
 0x1c8   : > { %v574_v48 = vadd.f32 %v573_v47, %v1524_v46  ;;  %v575_v49 = vpop.f32.mrb[1].mxu0  ;;  %v747_v47 = vrot.slane %v738_v38, %v1460_v9 }
 0x1c9   : > { %v576_v50 = vadd.f32 %v575_v49, %v1524_v46 }
 0x1ca   : > { %v578_v51 = vmax.f32 %v574_v48, 0.0  ;;  %v716_v48 = vld [vmem:[#allocation6 + $0x6] ss:$8 sm:$0x3] }
 0x1cb   : > { %v579_v52 = vmax.f32 %v576_v50, 0.0  ;;  %v725_v58 = vrot.slane %v716_v48, %v1460_v9 }
 0x1cc   : > { %680 = vst [vmem:[#allocation2 + $0x20] sm:$0xf] %v578_v51  ;;  %652 = vrot.lane.b32.xlu0 %v578_v51, %s1222_s26  ;;  %602 = vrot.lane.b32.xlu1 %v578_v51, %s1223_s14 }
 0x1cd   : > { %681 = vst [vmem:[#allocation2 + $0x28] sm:$0xf] %v579_v52 }
 0x1d0   : > { %580 = vrot.lane.b32.xlu0 %v578_v51, %s1224_s24  ;;  %604 = vrot.lane.b32.xlu1 %v579_v52, %s1223_s14  ;;  %s255_s14 = scalar_lea.vmem [#allocation8], %s985_s17 }
 0x1d4   : > { %630 = vrot.lane.b32.xlu0 %v578_v51, %s1225_s6  ;;  %654 = vrot.lane.b32.xlu1 %v579_v52, %s1222_s26  ;;  %s1000_s26 = sshll.u32 %s1284_s22, 7  ;;  %s1232_s22 = smov [#allocation8]  }
 0x1d5   : > { %s1150_s17 = sshll.u32 %s1232_s22, 4  ;;  %s1151_s17 = int_to_ptr.vmem [resolvable:$false] %s1150_s17 }
 0x1d6   : > { %s1152_s10 = scalar_lea.vmem %s1151_s17, 256 }
 0x1d8   : > { %682 = vrot.lane.b32.xlu0 %v578_v51, %s1226_s7  ;;  %582 = vrot.lane.b32.xlu1 %v579_v52, %s1224_s24  ;;  %s897_s24 = sshll.u32 %s255_s14, 4  ;;  %s1610_s24 = int_to_ptr.vmem [resolvable:$true] %s897_s24 }
 0x1d9   : > { %p1153_p10 = scmp.lt.s32.totalorder %s1610_s24, %s1151_s17 }
 0x1dc   : > { %732 = vrot.lane.b32.xlu0 %v578_v51, %s1227_s15  ;;  %632 = vrot.lane.b32.xlu1 %v579_v52, %s1225_s6 }
 0x1e0   : > { %710 = vrot.lane.b32.xlu0 %v578_v51, %s1228_s11  ;;  %684 = vrot.lane.b32.xlu1 %v579_v52, %s1226_s7 }
 0x1e4   : > { %760 = vrot.lane.b32.xlu0 %v578_v51, %s1229_s12  ;;  %734 = vrot.lane.b32.xlu1 %v579_v52, %s1227_s15  ;;  %s1608_s15 = scalar_lea.hbm %s1657_s5, %s1000_s26 }
 0x1e8   : > { %712 = vrot.lane.b32.xlu1 %v579_v52, %s1228_s11  ;;  %s883_s11 = scalar_lea.sflag [#allocation5], %s1399_s16 }
 0x1ec   : > { %762 = vrot.lane.b32.xlu1 %v579_v52, %s1229_s12  ;;  %s1146_s12 = scalar_lea.vmem %s1610_s24, 128 }
 0x1ed   : > { %p1147_p4 = scmp.ne.s32.totalorder %s1610_s24, %s1146_s12  ;;  %p1154_p13 = scmp.lt.s32.totalorder %s1152_s10, %s1146_s12 }
 0x1ef   : > { %p1148_p6 = pnand %p1147_p4, %p1354_p12  ;;  %p1155_p3 = por %p1154_p13, %p1153_p10 }
 0x1f1   : > { %p1149_p8 = pneg %p1148_p6 }
 0x1f3   : > { %p1156_p7 = pnand %p1155_p3, %p1149_p8 }
 0x23e   : > { %v653_v54 = vpop.permute.xlu0 %652  ;;  %v603_v55 = vpop.permute.xlu1 %602 }
 0x242   : > { %v581_v59 = vpop.permute.xlu0 %580  ;;  %v605_v60 = vpop.permute.xlu1 %604 }
 0x243   : > { %v606_v61 = vsel %vm290_vm2, %v603_v55, %v605_v60  ;;  %v607_v62 = vsel %vm290_vm2, %v605_v60, %v603_v55  ;;  %v766_v60 = vld [vmem:[#allocation6 + $0x10] ss:$8 sm:$0x3] }
 0x244   : > { %v620_v63 = vmul.f32 %v613_v56, %v607_v62  ;;  %v621_v2 = vmul.f32 %v617_v57, %v606_v61  ;;  %v721_v57 = vrot.slane %v716_v48, %v1458_v8 }
 0x246   : > { %v624_v6 = vrot.slane %v620_v63, 4  ;;  %v625_v10 = vrot.slane %v621_v2, 4  ;;  %v631_v11 = vpop.permute.xlu0 %630  ;;  %v655_v12 = vpop.permute.xlu1 %654 }
 0x247   : > { %v656_v13 = vsel %vm344_vm0, %v653_v54, %v655_v12  ;;  %v657_v14 = vsel %vm344_vm0, %v655_v12, %v653_v54 }
 0x248   : > { %628 = vst [vmem:[#allocation2] sm:$0xf0] %v624_v6  ;;  %629 = vst [vmem:[#allocation2 + $0x8] sm:$0xf0] %v625_v10  ;;  %v670_v15 = vmul.f32 %v663_v3, %v657_v14  ;;  %v671_v16 = vmul.f32 %v667_v4, %v656_v13  ;;  %v771_v14 = vrot.slane %v766_v60, %v1458_v8 }
 0x24a   : > { %v674_v20 = vrot.slane %v670_v15, 4  ;;  %v675_v21 = vrot.slane %v671_v16, 4  ;;  %v583_v22 = vpop.permute.xlu1 %582  ;;  %v683_v25 = vpop.permute.xlu0 %682  ;;  %v775_v15 = vrot.slane %v766_v60, %v1460_v9 }
 0x24b   : > { %v584_v23 = vsel %vm267_vm1, %v581_v59, %v583_v22  ;;  %v585_v24 = vsel %vm267_vm1, %v583_v22, %v581_v59 }
 0x24c   : > { %678 = vst [vmem:[#allocation2 + $0x10] sm:$0xf0] %v674_v20  ;;  %679 = vst [vmem:[#allocation2 + $0x18] sm:$0xf0] %v675_v21  ;;  %v598_v26 = vmul.f32 %v591_v17, %v585_v24  ;;  %v599_v27 = vmul.f32 %v595_v18, %v584_v23 }
 0x24e   : > { %600 = vst [vmem:[#allocation2] sm:$0xf] %v598_v26  ;;  %601 = vst [vmem:[#allocation2 + $0x8] sm:$0xf] %v599_v27  ;;  %v633_v31 = vpop.permute.xlu1 %632  ;;  %v733_v39 = vpop.permute.xlu0 %732 }
 0x24f   : > { %v634_v32 = vsel %vm320_vm3, %v631_v11, %v633_v31  ;;  %v635_v33 = vsel %vm320_vm3, %v633_v31, %v631_v11 }
 0x250   : > { %v648_v34 = vmul.f32 %v641_v28, %v635_v33  ;;  %v649_v35 = vmul.f32 %v645_v29, %v634_v32 }
 0x252   : > { %650 = vst [vmem:[#allocation2 + $0x10] sm:$0xf] %v648_v34  ;;  %651 = vst [vmem:[#allocation2 + $0x18] sm:$0xf] %v649_v35  ;;  %v685_v40 = vpop.permute.xlu1 %684  ;;  %v711_v54 = vpop.permute.xlu0 %710 }
 0x253   : > { %v686_v41 = vsel %vm376_vm4, %v683_v25, %v685_v40  ;;  %v687_v42 = vsel %vm376_vm4, %v685_v40, %v683_v25 }
 0x254   : > { %v700_v43 = vmul.f32 %v693_v36, %v686_v41  ;;  %v701_v44 = vmul.f32 %v697_v37, %v687_v42 }
 0x255   : > { %v784_v59 = vld [vmem:[#allocation2 + $0x8] sm:$0xff]  ;;  %v783_v62 = vld [vmem:[#allocation2] sm:$0xff] }
 0x256   : > { %v704_v49 = vrot.slane %v700_v43, 4  ;;  %v705_v50 = vrot.slane %v701_v44, 4  ;;  %v735_v51 = vpop.permute.xlu1 %734  ;;  %v761_v16 = vpop.permute.xlu0 %760 }
 0x257   : > { %v736_v52 = vsel %vm430_vm5, %v733_v39, %v735_v51  ;;  %v737_v53 = vsel %vm430_vm5, %v735_v51, %v733_v39 }
 0x258   : > { %708 = vst [vmem:[#allocation2 + $0x20] sm:$0xf0] %v704_v49  ;;  %709 = vst [vmem:[#allocation2 + $0x28] sm:$0xf0] %v705_v50  ;;  %v750_v55 = vmul.f32 %v743_v45, %v736_v52  ;;  %v751_v56 = vmul.f32 %v747_v47, %v737_v53 }
 0x259   : > { %v786_v61 = vld [vmem:[#allocation2 + $0x18] sm:$0xff]  ;;  %v785_v63 = vld [vmem:[#allocation2 + $0x10] sm:$0xff] }
 0x25a   : > { %v754_v2 = vrot.slane %v750_v55, 4  ;;  %v755_v3 = vrot.slane %v751_v56, 4  ;;  %v713_v4 = vpop.permute.xlu1 %712  ;;  %v1009_v5 = vpack.c.bf16 %v786_v61, %v784_v59  ;;  %v1011_v6 = vpack.c.bf16 %v785_v63, %v783_v62 }
 0x25b   : > { %v714_v10 = vsel %vm406_vm6, %v711_v54, %v713_v4  ;;  %v715_v11 = vsel %vm406_vm6, %v713_v4, %v711_v54 }
 0x25c   : > { %758 = vst [vmem:[#allocation2 + $0x30] sm:$0xf0] %v754_v2  ;;  %759 = vst [vmem:[#allocation2 + $0x38] sm:$0xf0] %v755_v3  ;;  %v728_v12 = vmul.f32 %v721_v57, %v714_v10  ;;  %v729_v13 = vmul.f32 %v725_v58, %v715_v11  ;;  %1010 = vmatprep.subr.bf16.mxu1 %v1009_v5 }
 0x25d   : > { %1012 = vmatpush1.bf16.msra.mxu1 %v1011_v6 }
 0x25e   : > { %730 = vst [vmem:[#allocation2 + $0x30] sm:$0xf] %v728_v12  ;;  %731 = vst [vmem:[#allocation2 + $0x38] sm:$0xf] %v729_v13  ;;  %v763_v17 = vpop.permute.xlu1 %762 }
 0x25f   : > { %v764_v18 = vsel %vm460_vm7, %v761_v16, %v763_v17  ;;  %v765_v19 = vsel %vm460_vm7, %v763_v17, %v761_v16  ;;  %v788_v22 = vld [vmem:[#allocation2 + $0x28] sm:$0xff]  ;;  %v787_v8 = vld [vmem:[#allocation2 + $0x20] sm:$0xff] }
 0x260   : > { %v778_v20 = vmul.f32 %v771_v14, %v764_v18  ;;  %v779_v21 = vmul.f32 %v775_v15, %v765_v19 }
 0x262   : > { %780 = vst [vmem:[#allocation2 + $0x40] sm:$0xf] %v778_v20  ;;  %781 = vst [vmem:[#allocation2 + $0x48] sm:$0xf] %v779_v21 }
 0x265   : > { %v790_v23 = vld [vmem:[#allocation2 + $0x38] sm:$0xff]  ;;  %v789_v24 = vld [vmem:[#allocation2 + $0x30] sm:$0xff] }
 0x266   : > { %v1013_v9 = vpack.c.bf16 %v790_v23, %v788_v22  ;;  %v1015_v25 = vpack.c.bf16 %v789_v24, %v787_v8 }
 0x268   : > { %1014 = vmatprep.subr.bf16.mxu1 %v1013_v9 }
 0x269   : > { %1016 = vmatpush1.bf16.msra.mxu1 %v1015_v25  ;;  %v792_v26 = vld [vmem:[#allocation2 + $0x48] sm:$0xf]  ;;  %v791_v27 = vld [vmem:[#allocation2 + $0x40] sm:$0xf] }
 0x26a   : > { %991 = vmatprep.subr.msk.mxu1 %vm500_vm8, %v792_v26 }
 0x26d   : > { %992 = vmatpush1.msk.msra.mxu1 %vm500_vm8, %v791_v27 }
 0x26e   : > { %993 = vmatmul.mubr.msk.f32.vlgmr.msra.gmra.mrb[0].mxu1 %vm496_vm9, %v782_v7 }
 0x341   : > { %v868_v28 = vpop.f32.mrb[0].mxu1 }
 0x342   : > { %v869_v29 = vadd.f32 %v868_v28, %v1524_v46  ;;  %v870_v30 = vpop.f32.mrb[1].mxu1 }
 0x343   : > { %v871_v31 = vadd.f32 %v870_v30, %v1524_v46 }
 0x344   : > { %v873_v32 = vadd.f32 %v869_v29, %v1413_v0 }
 0x345   : > { %v874_v33 = vadd.f32 %v871_v31, %v1422_v1 }
 0x346   : > { %v875_v34 = vmax.f32 %v873_v32, 0.0 }
 0x347   : > { %v876_v35 = vmax.f32 %v874_v33, 0.0 }
 0x349   : > { %v879_v36 = vcombine.low %v875_v34, %v876_v35 }
 0x34b   : > { %881 = vst [vmem:[%s255_s14] sm:$0xff] %v879_v36 }
 0x34c   : > { %1159 = shalt.err (!%p1156_p7)
}
 0x34d   : > { %s1160_s16 = scalar_lea.hbm %s1608_s15, 128  ;;  %s1164_s28 = scalar_lea.hbm %s1657_s5, 256 }
 0x34e   : > { %p1161_p9 = scmp.ne.s32.totalorder %s1608_s15, %s1160_s16  ;;  %p1165_p0 = scmp.lt.u32.totalorder %s1608_s15, %s1657_s5 }
 0x34f   : > { %p1166_p11 = scmp.lt.u32.totalorder %s1164_s28, %s1160_s16  ;;  %p1168_p4 = scmp.lt.u32.totalorder %s1160_s16, %s1608_s15 }
 0x350   : > { %p1162_p2 = pnand %p1161_p9, %p1354_p12 }
 0x351   : > { %p1167_p1 = por %p1166_p11, %p1165_p0 }
 0x352   : > { %p1163_p5 = pneg %p1162_p2 }
 0x353   : > { %p1169_p6 = por %p1168_p4, %p1167_p1 }
 0x355   : > { %p1170_p8 = pnand %p1169_p6, %p1163_p5 }
 0x357   : > { %1173 = shalt.err (!%p1170_p8)
}
 0x358   : > { %1023 = dma.vmem_to_hbm [thread:$0]  (%p1354_p12), %s1610_s24, 128, %s1608_s15, %s883_s11  }
 0x359 PF: > { %s909_s26 = sand.u32 1, %s1204_s18   ;;  %p1672_p10 = scmp.ne.s32.totalorder %s1662_s25, 0 }
 0x35a   : > { %p1673_p13 = scmp.ge.s32.totalorder %s1216_s21, 2  ;;  %s910_s14 = scalar_lea.sflag [#allocation5], %s909_s26 }
 0x35c   : > { %p1034_p3 = pnand %p1673_p13, %p1672_p10 }
 0x35e   : > { %1199 = dma.done.wait (!%p1034_p3), %s910_s14, 128  }
 0x35f   : > { %1201 = vsyncadd (!%p1034_p3), %s910_s14, 4294967168  ;;  %p19_p7 = scmp.ge.s32.totalorder %s1319_s30, 4   ;;  %s1674_s18 = smov %s1208_s19 }
 0x360   : > { %s1675_s19 = smov %s1212_s20  ;;  %s1676_s20 = smov %s1350_s8 }
 0x361   : > { %s1677_s21 = smov %s1319_s30  ;;  %21 = sbr.rel (!%p19_p7) target bundleno = 6 (0x6), region = 96 }
 0x368   :  { %915 = vsyncpa [#allocation4], 1 }
 0x369   :  { %917 = vsyncpa [#allocation4 + $0x1], 1 }
 0x36a   :  { %918 = vsyncpa [#allocation7], 1 }
 0x36b   :  { %919 = vsyncpa [#allocation5], 1 }
 0x36c   :  { %921 = vsyncpa [#allocation5 + $0x1], 1 }

</bundles_post_ra>
